<compile_context>
chip_gen: v5e
topology: v5e:2x2
jax: 0.10.0
libtpu: 0.0.40
codegen_flags: <defaults>
</compile_context>

<pallas_src>
import jax
import jax.numpy as jnp
from jax.experimental import pallas as pl
from jax.experimental.pallas import tpu as pltpu


def _round_up(x, m):
    return ((x + m - 1) // m) * m


def _cdiv(a, b):
    return -(-a // b)


# ----------------------------- glue (plain JAX) -----------------------------
def gcn_norm_dense(edge_index, num_nodes, nr=None, nk=None, dtype=jnp.float32):
    """Dense D^{-1/2}(A+I)D^{-1/2} with A_hat[dst, src] layout, built directly
    at the padded (nr, nk) shape (padding rows/cols stay zero).

    Mirrors PyG gcn_norm with add_remaining_self_loops: pre-existing self-loop
    edges are dropped before exactly one self-loop per node is added."""
    nr = num_nodes if nr is None else nr
    nk = num_nodes if nk is None else nk
    src = edge_index[0]
    dst = edge_index[1]
    not_loop = (src != dst).astype(jnp.float32)  # zero-weight existing self-loops
    loop = jnp.arange(num_nodes, dtype=src.dtype)

    row = jnp.concatenate([src, loop])
    col = jnp.concatenate([dst, loop])
    w = jnp.concatenate([not_loop, jnp.ones((num_nodes,), jnp.float32)])

    deg = jnp.zeros((num_nodes,), jnp.float32).at[col].add(w)
    deg_inv_sqrt = jnp.where(deg > 0, jax.lax.rsqrt(deg), 0.0)
    norm = deg_inv_sqrt[row] * w * deg_inv_sqrt[col]
    # Single padded f32 scatter, single cast to the compute dtype.
    a_hat = jnp.zeros((nr, nk), jnp.float32).at[col, row].add(norm)
    return a_hat.astype(dtype)


# ------------------------------ Pallas kernel -------------------------------
def _make_gcn_kernel(tk, xw_resident):
    """Kernel factory: closes over the K-tile size and XW residency mode."""

    def kernel(a_ref, xw_ref, b_ref, o_ref):
        # a_ref:  (tm, tk)        bf16 normalized-adjacency tile
        # xw_ref: (nk, dout) or (tk, dout) bf16 pre-transformed features
        # b_ref:  (1, dout)       f32 bias (padded)
        # o_ref:  (tm, dout)      f32 output tile, resident across the K axis
        k = pl.program_id(1)

        @pl.when(k == 0)
        def _():
            o_ref[...] = jnp.zeros_like(o_ref)

        if xw_resident:
            # XW lives fully in VMEM (loaded once); slice the current K chunk.
            start = pl.multiple_of(k * tk, 128)
            xw = xw_ref[pl.ds(start, tk), :]
        else:
            xw = xw_ref[...]

        o_ref[...] += jnp.dot(a_ref[...], xw,
                              preferred_element_type=jnp.float32)

        @pl.when(k == pl.num_programs(1) - 1)
        def _():
            o_ref[...] += b_ref[...]

    return kernel


def _vmem_limit_bytes(tm, tk, nk, dout, xw_resident):
    a_bytes = 2 * tm * tk * 2                      # double-buffered bf16 A
    xw_rows = nk if xw_resident else tk
    xw_bytes = 2 * xw_rows * dout * 2              # XW (budget 2 buffers)
    o_bytes = 2 * tm * dout * 4                    # f32 output block
    b_bytes = 2 * 8 * dout * 4                     # bias (sublane-padded)
    est = a_bytes + xw_bytes + o_bytes + b_bytes
    # Floor at 32 MiB (over the v5e scoped default), cap under v7x physical.
    return min(48 * 1024 * 1024, max(32 * 1024 * 1024, int(1.5 * est)))


def gcn_conv_pallas(x, edge_index, weight, bias, *, tm=512, tk=1024,
                    compute_dtype=jnp.bfloat16,
                    xw_vmem_budget=8 * 1024 * 1024):
    N, in_dim = x.shape
    out_dim = weight.shape[1]

    # Lane-dense output: pad feature dim to a multiple of 128.
    dout = _round_up(out_dim, 128)

    # Balance tile counts so padding waste stays small:
    #   tm -> multiple of 16 (bf16 sublane packing), tk -> multiple of 128.
    n_row_tiles = max(1, _cdiv(N, tm))
    tm = _round_up(_cdiv(N, n_row_tiles), 16)
    nr = tm * n_row_tiles
    n_k_tiles = max(1, _cdiv(N, tk))
    tk = _round_up(_cdiv(N, n_k_tiles), 128)
    nk = tk * n_k_tiles

    # Keep XW fully VMEM-resident when it fits the budget (no per-row-tile
    # re-streaming); otherwise fall back to per-K-tile streaming blocks.
    xw_resident = (nk * dout * 2) <= xw_vmem_budget

    # Padded normalized adjacency, built directly at (nr, nk) in bf16.
    a_p = gcn_norm_dense(edge_index, N, nr, nk, compute_dtype)

    # Hoisted dense transform X @ W, computed once in f32, padded to (nk, dout).
    x_p = jnp.zeros((nk, in_dim), jnp.float32).at[:N, :].set(
        x.astype(jnp.float32))
    w_p = jnp.zeros((in_dim, dout), jnp.float32).at[:, :out_dim].set(
        weight.astype(jnp.float32))
    xw_p = jnp.dot(x_p, w_p,
                   preferred_element_type=jnp.float32).astype(compute_dtype)

    b_p = jnp.zeros((1, dout), jnp.float32).at[0, :out_dim].set(
        bias.astype(jnp.float32))

    grid = (nr // tm, nk // tk)

    if xw_resident:
        xw_spec = pl.BlockSpec((nk, dout), lambda i, k: (0, 0))
    else:
        xw_spec = pl.BlockSpec((tk, dout), lambda i, k: (k, 0))

    out = pl.pallas_call(
        _make_gcn_kernel(tk, xw_resident),
        out_shape=jax.ShapeDtypeStruct((nr, dout), jnp.float32),
        grid_spec=pltpu.PrefetchScalarGridSpec(
            num_scalar_prefetch=0,
            grid=grid,
            in_specs=[
                pl.BlockSpec((tm, tk), lambda i, k: (i, k)),   # A_hat tile
                xw_spec,                                       # XW (resident or streamed)
                pl.BlockSpec((1, dout), lambda i, k: (0, 0)),  # bias
            ],
            out_specs=pl.BlockSpec((tm, dout), lambda i, k: (i, 0)),
        ),
        compiler_params=pltpu.CompilerParams(
            # Row axis sharded across TensorCores; K axis carries the resident
            # output accumulator so it must be arbitrary (sequential).
            dimension_semantics=("parallel", "arbitrary"),
            vmem_limit_bytes=_vmem_limit_bytes(tm, tk, nk, dout, xw_resident),
        ),
    )(a_p, xw_p, b_p)

    return out[:N, :out_dim]


# ------------------------- module-equivalent wrapper -------------------------
class NaAggregator2Pallas:
    """Mirror of NaAggregator2 for the 'gcn' aggregator."""

    def __init__(self, in_dim, out_dim, aggregator, key):
        assert aggregator == "gcn", "only the 'gcn' branch is implemented"
        self.aggregator = aggregator
        limit = (6.0 / (in_dim + out_dim)) ** 0.5  # glorot uniform (PyG default)
        self.weight = jax.random.uniform(
            key, (in_dim, out_dim), jnp.float32, -limit, limit
        )
        self.bias = jnp.zeros((out_dim,), jnp.float32)  # PyG zeros the bias

    def forward(self, x, edge_index, size=None, **tile_kwargs):
        # 'gcn' branch: self._op(x, edge_index, size=size); size unused
        return gcn_conv_pallas(x, edge_index, self.weight, self.bias,
                               **tile_kwargs)


# ----------------------------------- main ------------------------------------
if __name__ == "__main__":
    key = jax.random.PRNGKey(0)
    kx, ke, kw, kx2, ke2 = jax.random.split(key, 5)

    # Small shapes matching the module's forward (node features + edge_index).
    N, in_dim, out_dim, E = 16, 32, 32, 48
    x = jax.random.normal(kx, (N, in_dim), dtype=jnp.float32)
    edge_index = jax.random.randint(ke, (2, E), 0, N, dtype=jnp.int32)

    op = NaAggregator2Pallas(in_dim, out_dim, "gcn", kw)
    out = op.forward(x, edge_index, size=None)
    out = jax.block_until_ready(out)
    assert out.shape == (N, out_dim)

    # Reference checks (f32 reference, plus a bf16-quantized reference with a
    # tighter tolerance to isolate kernel vs. quantization error).
    a_hat = gcn_norm_dense(edge_index, N)
    xw = x @ op.weight
    ref_f32 = a_hat @ xw + op.bias
    ref_bf16 = (a_hat.astype(jnp.bfloat16).astype(jnp.float32)
                @ xw.astype(jnp.bfloat16).astype(jnp.float32)) + op.bias
    assert jnp.allclose(out, ref_bf16, atol=1e-2, rtol=1e-2), "bf16 ref mismatch"
    assert jnp.allclose(out, ref_f32, atol=5e-2, rtol=5e-2), "f32 ref mismatch"

    # Second check: exercises the full tiled path (multiple row blocks, multiple
    # K steps, remainder padding) with the VMEM-resident XW slicing path.
    N2, E2 = 300, 900
    x2 = jax.random.normal(kx2, (N2, in_dim), dtype=jnp.float32)
    edge_index2 = jax.random.randint(ke2, (2, E2), 0, N2, dtype=jnp.int32)
    out2 = gcn_conv_pallas(x2, edge_index2, op.weight, op.bias, tm=128, tk=128)
    out2 = jax.block_until_ready(out2)
    a_hat2 = gcn_norm_dense(edge_index2, N2)
    ref2 = a_hat2 @ (x2 @ op.weight) + op.bias
    assert out2.shape == (N2, out_dim)
    assert jnp.allclose(out2, ref2, atol=5e-2, rtol=5e-2), "tiled ref mismatch"

    # Third check: force the streaming-XW fallback path (budget 0) so both
    # BlockSpec variants compile and run.
    out3 = gcn_conv_pallas(x2, edge_index2, op.weight, op.bias,
                           tm=128, tk=128, xw_vmem_budget=0)
    out3 = jax.block_until_ready(out3)
    assert jnp.allclose(out3, ref2, atol=5e-2, rtol=5e-2), "streamed ref mismatch"

    print("KERNEL_OK")
</pallas_src>

<mosaic_0001>
module attributes {stable_mosaic.version = 11 : i64} {
  func.func @kernel(%arg0: i32, %arg1: i32, %arg2: memref<16x128xbf16, #tpu.memory_space<vmem>>, %arg3: memref<128x128xbf16, #tpu.memory_space<vmem>>, %arg4: memref<1x128xf32, #tpu.memory_space<vmem>>, %arg5: memref<16x128xf32, #tpu.memory_space<vmem>>) attributes {dimension_semantics = [#tpu.dimension_semantics<parallel>, #tpu.dimension_semantics<arbitrary>], iteration_bounds = array<i64: 1, 1>, scalar_prefetch = 0 : i64, scratch_operands = 0 : i64, tpu.core_type = #tpu.core_type<tc>, window_params = [{transform_indices = @transform_0, window_bounds = array<i64: 16, 128>}, {pipeline_mode = #tpu.pipeline_mode<synchronous>, transform_indices = @transform_1, window_bounds = array<i64: 128, 128>}, {pipeline_mode = #tpu.pipeline_mode<synchronous>, transform_indices = @transform_2, window_bounds = array<i64: 1, 128>}, {transform_indices = @transform_3, window_bounds = array<i64: 16, 128>}]} {
    %c0_i32 = arith.constant 0 : i32
    %0 = arith.cmpi eq, %arg1, %c0_i32 : i32
    %1 = arith.extui %0 : i1 to i32
    %c0_i32_0 = arith.constant 0 : i32
    %2 = arith.cmpi ne, %1, %c0_i32_0 : i32
    scf.if %2 {
      %cst_9 = arith.constant 0.000000e+00 : f32
      %15 = vector.broadcast %cst_9 : f32 to vector<16x128xf32>
      %c0_10 = arith.constant 0 : index
      %c0_11 = arith.constant 0 : index
      %16 = vector.load %arg5[%c0_10, %c0_11] : memref<16x128xf32, #tpu.memory_space<vmem>>, vector<16x128xf32>
      tpu.vector_store %arg5[%c0_10, %c0_11], %15 {strides = array<i32>} : memref<16x128xf32, #tpu.memory_space<vmem>>, vector<16x128xf32>,
    } else {
    }
    %c128_i32 = arith.constant 128 : i32
    %3 = arith.muli %arg1, %c128_i32 : i32
    %4 = tpu.assume_multiple %3, 128 : i32
    %5 = arith.index_cast %4 : i32 to index
    %c0 = arith.constant 0 : index
    %6 = vector.load %arg3[%5, %c0] : memref<128x128xbf16, #tpu.memory_space<vmem>>, vector<128x128xbf16>
    %c0_1 = arith.constant 0 : index
    %c0_2 = arith.constant 0 : index
    %7 = vector.load %arg5[%c0_1, %c0_2] : memref<16x128xf32, #tpu.memory_space<vmem>>, vector<16x128xf32>
    %c0_3 = arith.constant 0 : index
    %c0_4 = arith.constant 0 : index
    %8 = vector.load %arg2[%c0_3, %c0_4] : memref<16x128xbf16, #tpu.memory_space<vmem>>, vector<16x128xbf16>
    %cst = arith.constant dense<0.000000e+00> : vector<16x128xf32>
    %9 = tpu.matmul %8, %6, %cst {dimension_numbers = #tpu.dot_dimension_numbers<[1], [0], [0], [1], [0, 0, 1, 1], [], []>} : vector<16x128xbf16>, vector<128x128xbf16>, vector<16x128xf32> -> vector<16x128xf32>
    %10 = arith.addf %7, %9 : vector<16x128xf32>
    %c0_5 = arith.constant 0 : index
    %c0_6 = arith.constant 0 : index
    %11 = vector.load %arg5[%c0_5, %c0_6] : memref<16x128xf32, #tpu.memory_space<vmem>>, vector<16x128xf32>
    tpu.vector_store %arg5[%c0_5, %c0_6], %10 {strides = array<i32>} : memref<16x128xf32, #tpu.memory_space<vmem>>, vector<16x128xf32>,
    %c0_i32_7 = arith.constant 0 : i32
    %12 = arith.cmpi eq, %arg1, %c0_i32_7 : i32
    %13 = arith.extui %12 : i1 to i32
    %c0_i32_8 = arith.constant 0 : i32
    %14 = arith.cmpi ne, %13, %c0_i32_8 : i32
    scf.if %14 {
      %c0_9 = arith.constant 0 : index
      %c0_10 = arith.constant 0 : index
      %15 = vector.load %arg5[%c0_9, %c0_10] : memref<16x128xf32, #tpu.memory_space<vmem>>, vector<16x128xf32>
      %c0_11 = arith.constant 0 : index
      %c0_12 = arith.constant 0 : index
      %16 = vector.load %arg4[%c0_11, %c0_12] : memref<1x128xf32, #tpu.memory_space<vmem>>, vector<1x128xf32>
      %17 = vector.broadcast %16 : vector<1x128xf32> to vector<16x128xf32>
      %18 = arith.addf %15, %17 : vector<16x128xf32>
      %c0_13 = arith.constant 0 : index
      %c0_14 = arith.constant 0 : index
      %19 = vector.load %arg5[%c0_13, %c0_14] : memref<16x128xf32, #tpu.memory_space<vmem>>, vector<16x128xf32>
      tpu.vector_store %arg5[%c0_13, %c0_14], %18 {strides = array<i32>} : memref<16x128xf32, #tpu.memory_space<vmem>>, vector<16x128xf32>,
    } else {
    }
    return
  }
  func.func @transform_0(%arg0: i32, %arg1: i32) -> (i32, i32) {
    %c0_i32 = arith.constant 0 : i32
    return %arg0, %arg1 : i32, i32
  }
  func.func @transform_1(%arg0: i32, %arg1: i32) -> (i32, i32) {
    %c0_i32 = arith.constant 0 : i32
    %c0_i32_0 = arith.constant 0 : i32
    %c0_i32_1 = arith.constant 0 : i32
    return %c0_i32, %c0_i32_0 : i32, i32
  }
  func.func @transform_2(%arg0: i32, %arg1: i32) -> (i32, i32) {
    %c0_i32 = arith.constant 0 : i32
    %c0_i32_0 = arith.constant 0 : i32
    %c0_i32_1 = arith.constant 0 : i32
    return %c0_i32, %c0_i32_0 : i32, i32
  }
  func.func @transform_3(%arg0: i32, %arg1: i32) -> (i32, i32) {
    %c0_i32 = arith.constant 0 : i32
    %c0_i32_0 = arith.constant 0 : i32
    return %arg0, %c0_i32 : i32, i32
  }
}

</mosaic_0001>

<bundles_post_ra>
// kernel: tpu_custom_call.1
= control target key start
LH: loop header
LB: loop body
LE: loop exit
PB: predicated region body
PF: predicated region fallthrough
CT: control target
= control target key end

     0   :  { %8 = vsyncpa [#allocation3], 0  ;;  %s356_s0 = inlined_call_operand.hbm [shape: bf16[16,128], index: 0, kind: input, shape index: {}]   ;;  %s357_s1 = inlined_call_operand.hbm [shape: bf16[128,128], index: 1, kind: input, shape index: {}]   ;;  %s358_s2 = inlined_call_operand.vmem [shape: f32[1,128], index: 2, kind: input, shape index: {}]   ;;  %s359_s3 = inlined_call_operand.hbm [shape: f32[16,128], index: 3, kind: output, shape index: {}]  }
   0x1   :  { %9 = vsyncpa [#allocation6], 0 }
   0x2   :  { %10 = vsyncpa [#allocation4], 0  ;;  %s15_s14 = sshll.u32 %s356_s0, 4  ;;  %s317_s15 = smov [#allocation2]   ;;  %s16_s14 = int_to_ptr.hbm [resolvable:$true] %s15_s14 }
   0x3   :  { %s17_s16 = sshll.u32 %s317_s15, 4  ;;  %s28_s19 = sshll.u32 %s357_s1, 4  ;;  %s18_s16 = int_to_ptr.vmem [resolvable:$true] %s17_s16  ;;  %s29_s19 = int_to_ptr.hbm [resolvable:$true] %s28_s19 }
   0x4   :  { %s318_s20 = smov 64   ;;  %s319_s21 = smov 4  }
   0x5   :  { %23 = dma.hbm_to_vmem [thread:$0]  %s16_s14, 128, %s18_s16, [#allocation3], %s318_s20, %s318_s20, %s319_s21  }
   0x6   :  { %s320_s22 = smov [#allocation5]  }
   0x7   :  { %s30_s23 = sshll.u32 %s320_s22, 4  ;;  %s31_s23 = int_to_ptr.vmem [resolvable:$true] %s30_s23 }
   0x8   :  { %36 = dma.hbm_to_vmem [thread:$0]  %s29_s19, 1024, %s31_s23, [#allocation6], %s318_s20, %s318_s20, %s319_s21  }
   0x9   :  { %311 = dma.done.wait [#allocation3], 128  }
   0xa   :  { %312 = vsyncadd [#allocation3], 4294967168 }
   0xb   :  { %313 = dma.done.wait [#allocation6], 1024  }
   0xc   :  { %314 = vsyncadd [#allocation6], 4294966272  ;;  %v228_v0 = vld [vmem:[#allocation5 + $0x38] sm:$0xff]  ;;  %v227_v1 = vld [vmem:[#allocation5 + $0x30] sm:$0xff]  ;;  %s321_s24 = smov [#allocation7]   ;;  %s169_s28 = sshll.u32 %s359_s3, 4  ;;  %s170_s28 = int_to_ptr.hbm [resolvable:$true] %s169_s28 }
   0xd   :  { %132 = vmatpush.bf16.msra.mxu0 %v228_v0  ;;  %v226_v2 = vld [vmem:[#allocation5 + $0x28] sm:$0xff]  ;;  %v225_v3 = vld [vmem:[#allocation5 + $0x20] sm:$0xff]  ;;  %v224_v4 = vld [vmem:[#allocation5 + $0x18] sm:$0xff]  ;;  %s167_s25 = sshll.u32 %s321_s24, 4  ;;  %s322_s29 = smov 128   ;;  %s168_s25 = int_to_ptr.vmem [resolvable:$true] %s167_s25 }
   0xe   :  { %v223_v5 = vld [vmem:[#allocation5 + $0x10] sm:$0xff]  ;;  %v222_v6 = vld [vmem:[#allocation5 + $0x8] sm:$0xff]  ;;  %v221_v7 = vld [vmem:[#allocation5] sm:$0xff]  ;;  %s323_s30 = smov 8  }
   0xf   :  { %v229_v8 = vld [vmem:[#allocation2] sm:$0xff] }
  0x10   :  { %v238_v9 = vld [vmem:[%s358_s2] ss:$0 sm:$0xff] }
  0x11   :  { %133 = vmatpush.bf16.msra.mxu0 %v227_v1 }
  0x15   :  { %134 = vmatpush.bf16.msra.mxu0 %v226_v2 }
  0x19   :  { %135 = vmatpush.bf16.msra.mxu0 %v225_v3 }
  0x1d   :  { %136 = vmatpush.bf16.msra.mxu0 %v224_v4 }
  0x21   :  { %137 = vmatpush.bf16.msra.mxu0 %v223_v5 }
  0x25   :  { %138 = vmatpush.bf16.msra.mxu0 %v222_v6 }
  0x29   :  { %139 = vmatpush.bf16.msra.mxu0 %v221_v7 }
  0x2c   :  { %140 = vmatmul.bf16.vlgmr.msra.gmra.mxu0 %v229_v8 }
  0xa9   :  { %v141_v10 = vpop.f32.mrf.mxu0 }
  0xaa   :  { %v159_v11 = vadd.f32 %v238_v9, %v141_v10 }
  0xac   :  { %161 = vst [vmem:[#allocation7] sm:$0xff] %v159_v11 }
  0xb1   :  { %v143_v12 = vpop.f32.mrf.mxu0 }
  0xb2   :  { %v160_v13 = vadd.f32 %v238_v9, %v143_v12 }
  0xb4   :  { %162 = vst [vmem:[#allocation7 + $0x8] sm:$0xff] %v160_v13 }
  0xb5   :  { %175 = dma.vmem_to_hbm [thread:$0]  %s168_s25, 256, %s170_s28, [#allocation4], %s322_s29, %s322_s29, %s323_s30  }
  0xb6   :  { %315 = dma.done.wait [#allocation4], 256  }
  0xb7   :  { %316 = vsyncadd [#allocation4], 4294967040 }
  0xb8   :  { %180 = vsyncpa [#allocation3], 1 }
  0xb9   :  { %181 = vsyncpa [#allocation6], 1 }
  0xba   :  { %182 = vsyncpa [#allocation4], 1 }

</bundles_post_ra>
